<compile_context>
chip_gen: v6e
topology: v6e:2x2x1
jax: 0.10.0
libtpu: 0.0.40
codegen_flags: <defaults>
</compile_context>

<pallas_src>
import functools
import math

import jax
import jax.numpy as jnp
from jax.experimental import pallas as pl
from jax.experimental.pallas import tpu as pltpu


# ---------------------------------------------------------------------------
# Kernels.  Blocks: x/out/mask -> (ts, B*D)  (sublane = seq, lane = B*D dense),
#                   pe          -> (ts, D).
# ---------------------------------------------------------------------------
def pe_add_kernel(x_ref, pe_ref, o_ref, *, batch, d_model):
    pe = pe_ref[...]                                    # (ts, D), loaded once
    for b in range(batch):                              # static unroll: lane slices
        sl = slice(b * d_model, (b + 1) * d_model)
        o_ref[:, sl] = x_ref[:, sl] + pe


def pe_add_dropout_kernel(x_ref, pe_ref, m_ref, o_ref, *, batch, d_model):
    # m_ref holds keep_mask * 1/(1-p) in x.dtype -> dropout is one fused multiply.
    pe = pe_ref[...]
    for b in range(batch):
        sl = slice(b * d_model, (b + 1) * d_model)
        o_ref[:, sl] = (x_ref[:, sl] + pe) * m_ref[:, sl]


# ---------------------------------------------------------------------------
# Helpers
# ---------------------------------------------------------------------------
def make_positional_encoding_table(d_model, max_len=5000, dtype=jnp.float32):
    """Matches the PyTorch buffer: pe[:, 0::2]=sin, pe[:, 1::2]=cos, (max_len, 1, D)."""
    assert d_model % 2 == 0, "PyTorch reference requires an even d_model"
    position = jnp.arange(max_len, dtype=jnp.float32)[:, None]            # (max_len, 1)
    div_term = jnp.exp(jnp.arange(0, d_model, 2, dtype=jnp.float32)
                       * (-math.log(10000.0) / d_model))                  # (D/2,)
    ang = position * div_term                                             # (max_len, D/2)
    pe = jnp.stack([jnp.sin(ang), jnp.cos(ang)], axis=-1)                 # interleave
    pe = pe.reshape(max_len, d_model)
    return pe[:, None, :].astype(dtype)                                   # (max_len, 1, D)


def _choose_seq_tile(S, row_bytes, target_block_bytes):
    """Sequence tile: ~target_block_bytes per x block, multiple of 8 sublanes,
    and >= 2 tiles along the parallel grid axis when possible (v7x megacore)."""
    ts = max(1, target_block_bytes // max(1, row_bytes))
    ts = min(ts, S)
    if ts >= 8:
        ts = (ts // 8) * 8
    elif S >= 8:
        ts = 8
    else:
        ts = S                                       # tiny seq: full-dim block
    if S > 8 and pl.cdiv(S, ts) < 2:
        ts = min(S, max(8, (((S + 1) // 2) + 7) // 8 * 8))
    return ts


# ---------------------------------------------------------------------------
# Forward wrapper
# ---------------------------------------------------------------------------
def positional_encoding_forward(x, pe, *, dropout_rate=0.1, training=False,
                                dropout_key=None, target_block_bytes=2 << 20):
    """x: (S, B, D) seq-first (PyTorch layout); pe: (max_len, 1, D)."""
    S, B, D = x.shape
    assert pe.ndim == 3 and pe.shape[1] == 1 and pe.shape[2] == D and pe.shape[0] >= S
    if pe.dtype != x.dtype:
        # Store the table in the model dtype to make this a no-op (perf note).
        pe = pe.astype(x.dtype)

    itemsize = jnp.dtype(x.dtype).itemsize
    # Free reshapes: seq on sublanes, full (B*D) on lanes -> dense stores.
    x2 = x.reshape(S, B * D)
    pe2 = pe.reshape(pe.shape[0], D)

    ts = _choose_seq_tile(S, B * D * itemsize, target_block_bytes)
    if ts == S and S % 8 != 0:
        # Full-dim block on pe too, so the block shape equals the array dims.
        pe2 = pe2[:S]
    grid = (pl.cdiv(S, ts),)

    x_spec = pl.BlockSpec((ts, B * D), lambda i: (i, 0))
    pe_spec = pl.BlockSpec((ts, D), lambda i: (i, 0))
    out_spec = pl.BlockSpec((ts, B * D), lambda i: (i, 0))
    out_shape = jax.ShapeDtypeStruct((S, B * D), x.dtype)

    use_dropout = training and dropout_rate > 0.0
    n_streams = 4 if use_dropout else 3                  # x, pe, (mask), out
    block_bytes = ts * B * D * itemsize
    vmem_limit = int(min(40 << 20, max(16 << 20, 4 * n_streams * block_bytes)))
    cparams = pltpu.CompilerParams(dimension_semantics=("parallel",),
                                   vmem_limit_bytes=vmem_limit)

    if not use_dropout:
        # Eval mode: nn.Dropout is the identity -> fused broadcast add only.
        y2 = pl.pallas_call(
            functools.partial(pe_add_kernel, batch=B, d_model=D),
            out_shape=out_shape,
            grid=grid,
            in_specs=[x_spec, pe_spec],
            out_specs=out_spec,
            input_output_aliases={0: 0},
            compiler_params=cparams,
        )(x2, pe2)
        return y2.reshape(S, B, D)

    assert dropout_key is not None, "training=True requires dropout_key"
    keep = jax.random.bernoulli(dropout_key, 1.0 - dropout_rate, (S, B * D))
    mask = keep.astype(x.dtype) * (1.0 / (1.0 - dropout_rate))
    y2 = pl.pallas_call(
        functools.partial(pe_add_dropout_kernel, batch=B, d_model=D),
        out_shape=out_shape,
        grid=grid,
        in_specs=[x_spec, pe_spec, x_spec],               # mask tiled like x
        out_specs=out_spec,
        input_output_aliases={0: 0},
        compiler_params=cparams,
    )(x2, pe2, mask)
    return y2.reshape(S, B, D)


# ---------------------------------------------------------------------------
# Self-test
# ---------------------------------------------------------------------------
if __name__ == "__main__":
    S, B, D = 16, 2, 32                      # small: seq=16, batch=2, d_model=32
    MAX_LEN = 64
    DROPOUT = 0.1

    key = jax.random.PRNGKey(0)
    kx, kd = jax.random.split(key)
    x = jax.random.normal(kx, (S, B, D), jnp.float32)
    pe = make_positional_encoding_table(D, max_len=MAX_LEN, dtype=jnp.float32)

    # Eval mode (dropout == identity): deterministic check vs pure-JAX reference.
    fwd_eval = jax.jit(functools.partial(positional_encoding_forward,
                                         dropout_rate=DROPOUT, training=False))
    y = fwd_eval(x, pe)
    jax.block_until_ready(y)
    ref = x + pe[:S]
    assert y.shape == (S, B, D) and y.dtype == jnp.float32
    assert jnp.allclose(y, ref, atol=1e-6, rtol=1e-6)

    # Training mode: fused scaled keep-mask dropout (mask derived from dropout_key,
    # so the reference can reproduce it exactly).
    fwd_train = jax.jit(functools.partial(positional_encoding_forward,
                                          dropout_rate=DROPOUT, training=True))
    y_tr = fwd_train(x, pe, dropout_key=kd)
    jax.block_until_ready(y_tr)
    keep = jax.random.bernoulli(kd, 1.0 - DROPOUT, (S, B * D)).reshape(S, B, D)
    ref_tr = (x + pe[:S]) * (keep.astype(jnp.float32) * (1.0 / (1.0 - DROPOUT)))
    assert y_tr.shape == (S, B, D) and y_tr.dtype == jnp.float32
    assert jnp.allclose(y_tr, ref_tr, atol=1e-6, rtol=1e-6)

    print("KERNEL_OK")
</pallas_src>

<mosaic_0001>
module attributes {stable_mosaic.version = 11 : i64} {
  func.func @pe_add_kernel(%arg0: i32, %arg1: memref<8x64xf32, #tpu.memory_space<vmem>>, %arg2: memref<8x32xf32, #tpu.memory_space<vmem>>, %arg3: memref<8x64xf32, #tpu.memory_space<vmem>>) attributes {dimension_semantics = [#tpu.dimension_semantics<parallel>], iteration_bounds = array<i64: 2>, scalar_prefetch = 0 : i64, scratch_operands = 0 : i64, tpu.core_type = #tpu.core_type<tc>, window_params = [{transform_indices = @transform_0, window_bounds = array<i64: 8, 64>}, {transform_indices = @transform_1, window_bounds = array<i64: 8, 32>}, {transform_indices = @transform_2, window_bounds = array<i64: 8, 64>}]} {
    %c0 = arith.constant 0 : index
    %c0_0 = arith.constant 0 : index
    %0 = vector.load %arg2[%c0, %c0_0] : memref<8x32xf32, #tpu.memory_space<vmem>>, vector<8x32xf32>
    %c0_1 = arith.constant 0 : index
    %c0_2 = arith.constant 0 : index
    %1 = vector.load %arg1[%c0_1, %c0_2] : memref<8x64xf32, #tpu.memory_space<vmem>>, vector<8x32xf32>
    %2 = arith.addf %1, %0 : vector<8x32xf32>
    %c0_3 = arith.constant 0 : index
    %c0_4 = arith.constant 0 : index
    %3 = vector.load %arg3[%c0_3, %c0_4] : memref<8x64xf32, #tpu.memory_space<vmem>>, vector<8x32xf32>
    tpu.vector_store %arg3[%c0_3, %c0_4], %2 {strides = array<i32>} : memref<8x64xf32, #tpu.memory_space<vmem>>, vector<8x32xf32>,
    %c0_5 = arith.constant 0 : index
    %c32 = arith.constant 32 : index
    %4 = vector.load %arg1[%c0_5, %c32] : memref<8x64xf32, #tpu.memory_space<vmem>>, vector<8x32xf32>
    %5 = arith.addf %4, %0 : vector<8x32xf32>
    %c0_6 = arith.constant 0 : index
    %c32_7 = arith.constant 32 : index
    %6 = vector.load %arg3[%c0_6, %c32_7] : memref<8x64xf32, #tpu.memory_space<vmem>>, vector<8x32xf32>
    tpu.vector_store %arg3[%c0_6, %c32_7], %5 {strides = array<i32>} : memref<8x64xf32, #tpu.memory_space<vmem>>, vector<8x32xf32>,
    return
  }
  func.func @transform_0(%arg0: i32) -> (i32, i32) {
    %c0_i32 = arith.constant 0 : i32
    %c0_i32_0 = arith.constant 0 : i32
    return %arg0, %c0_i32 : i32, i32
  }
  func.func @transform_1(%arg0: i32) -> (i32, i32) {
    %c0_i32 = arith.constant 0 : i32
    %c0_i32_0 = arith.constant 0 : i32
    return %arg0, %c0_i32 : i32, i32
  }
  func.func @transform_2(%arg0: i32) -> (i32, i32) {
    %c0_i32 = arith.constant 0 : i32
    %c0_i32_0 = arith.constant 0 : i32
    return %arg0, %c0_i32 : i32, i32
  }
}

</mosaic_0001>

<bundles_post_ra>
// kernel: positional_encoding_forward.1
= control target key start
LH: loop header
LB: loop body
LE: loop exit
PB: predicated region body
PF: predicated region fallthrough
CT: control target
= control target key end

     0   :  { %s277_s9 = smov 0   ;;  %s297_s0 = inlined_call_operand.vmem [shape: f32[16,64], index: 0, kind: input, shape index: {}, may-alias: {0,2}]   ;;  %s298_s1 = inlined_call_operand.vmem [shape: f32[64,32], index: 1, kind: input, shape index: {}]   ;;  %s299_s2 = inlined_call_operand.vmem [shape: f32[16,64], index: 2, kind: output, shape index: {}, may-alias: {0,2}]  }
   0x1 LB: > { %s234_s10 = sadd.s32 4294967295, %s259_s9   ;;  %p238_p0 = scmp.ge.s32.totalorder %s259_s9, 1  ;;  %s259_s9 = sphi %s277_s9, %s12_s9  }
   0x2   : > { %p120_p1 = scmp.lt.s32.totalorder %s259_s9, 3 }
   0x4   : > { %p121_p2 = pnand %p238_p0, %p120_p1 }
   0x5   : > { %p144_p3 = scmp.lt.s32.totalorder (!%p121_p2), %s234_s10, 1  ;;  %p148_p4 = scmp.lt.s32.totalorder (!%p121_p2), %s234_s10, 7 }
   0x6   : > { %124 = sbr.rel (%p121_p2) target bundleno = 135 (0x87), region = 28  ;;  %s261_s23 = smov (!%p121_p2), 32  }
   0xb   : > { %s145_s11 = scalar_select %p144_p3, %s234_s10, 1  ;;  %vm159_vm0 = vcmask 261120   ;;  %vm167_vm1 = vcmask 523520  }
   0xc   : > { %s301_s10 = smov (!%p148_p4, %s234_s10), 7 }
   0xd   : > { %s239_s12 = sshll.u32 %s145_s11, 3  ;;  %s240_s16 = sshll.u32 %s301_s10, 3 }
   0xe   : > { %s147_s15 = scalar_lea.vmem %s297_s0, %s239_s12  ;;  %s151_s19 = scalar_lea.vmem %s298_s1, %s240_s16 }
   0xf   : > { %v157_v0 = vld [vmem:[%s147_s15] sm:$0xff]  ;;  %s155_s22 = scalar_lea.vmem %s299_s2, %s239_s12 }
  0x10   : > { %v156_v1 = vld [vmem:[%s151_s19] sm:$0xff] }
  0x11   : > { %v158_v2 = vadd.f32 %v157_v0, %v156_v1  ;;  %163 = vrot.lane.b32.xlu0 %v156_v1, %s261_s23 }
  0x13   : > { %160 = vst.msk [vmem:[%s155_s22] sm:$0xff] %vm159_vm0, %v158_v2 }
  0x1a   : > { %v161_v3 = vld [vmem:[%s147_s15] sm:$0xff] }
  0x83   : > { %v164_v4 = vpop.permute.xlu0 %163 }
  0x84   : > { %v166_v5 = vadd.f32 %v164_v4, %v161_v3 }
  0x86   : > { %168 = vst.msk [vmem:[%s155_s22] sm:$0xff] %vm167_vm1, %v166_v5 }
  0x87 PF: > { %s12_s9 = sadd.s32 1, %s259_s9  }
  0x88   : > { %p9_p5 = scmp.ge.s32.totalorder %s12_s9, 4  }
  0x8a   :  { %11 = sbr.rel (!%p9_p5) target bundleno = 1 (0x1), region = 61 }

</bundles_post_ra>
